<compile_context>
chip_gen: v6e
topology: v6e:2x2x1
jax: 0.10.0
libtpu: 0.0.40
codegen_flags: <defaults>
</compile_context>

<pallas_src>
import jax
import jax.numpy as jnp
import numpy as np
from jax.experimental import pallas as pl
from jax.experimental.pallas import tpu as pltpu

_LANE = 128
_MAX_TILE_N = 32768          # batch rows (lanes) per output block


def _round_up(v, m):
    return (v + m - 1) // m * m


def lenet_kernel(b1_ref, w2s_ref, b2_ref, wf1s_ref, bf1_ref, wf2_ref, bf2_ref,
                 out_ref):
    """Collapsed LeNet forward for one batch tile.

    Orientation: features on sublanes, replicated/batch on lanes, so the final
    store into the (3, TILE_N) output block is lane-dense.

    b1_ref   : (6, 128)    conv1 bias, lane-replicated
    w2s_ref  : (16, 6)     conv2 weight summed over kw        (out, in)
    b2_ref   : (16, 128)   conv2 bias, lane-replicated
    wf1s_ref : (16, 16)    fc1 weight summed over flatten h'  (out, in)
    bf1_ref  : (16, 128)   fc1 bias, lane-replicated
    wf2_ref  : (3, 16)     fc2 weight                         (out, in)
    bf2_ref  : (3, 128)    fc2 bias, lane-replicated
    out_ref  : (3, TILE_N) transposed logits tile
    """
    pooled = jnp.maximum(b1_ref[...], 0.0)                               # (6, 128)
    feat = jnp.maximum(
        jnp.dot(w2s_ref[...], pooled, preferred_element_type=jnp.float32)
        + b2_ref[...], 0.0)                                              # (16, 128)
    a = jnp.maximum(
        jnp.dot(wf1s_ref[...], feat, preferred_element_type=jnp.float32)
        + bf1_ref[...], 0.0)                                             # (16, 128)
    logits = (jnp.dot(wf2_ref[...], a, preferred_element_type=jnp.float32)
              + bf2_ref[...])                                            # (3, 128)
    # All 128 lanes are identical; lane-broadcast lane 0 across the batch tile.
    out_ref[...] = jnp.broadcast_to(logits[:, :1], out_ref.shape)


def lenet_forward(x, params):
    """x: (N, D) float32 with D in {3, 4} (fc expects 16*2*1 = 32 features)."""
    w1c, b1, w2c, b2, wf1, bf1, wf2, bf2 = params
    n, d = x.shape
    assert d in (3, 4), "fc(32,16) requires conv feature map 16x2x1 => D in {3,4}"
    del w1c  # conv1 weight only ever multiplies the zero-padding rows (dead).

    # Host-side (free) parameter re-layout for the collapsed forward.
    def lane_rep(v):
        v = v.astype(jnp.float32).reshape(-1, 1)
        return jnp.broadcast_to(v, (v.shape[0], _LANE))

    b1_p = lane_rep(b1)                                               # (6, 128)
    b2_p = lane_rep(b2)                                               # (16, 128)
    bf1_p = lane_rep(bf1)                                             # (16, 128)
    bf2_p = lane_rep(bf2)                                             # (3, 128)
    w2s = (w2c[:, :, 0, 0] + w2c[:, :, 0, 1]).astype(jnp.float32)     # (16, 6)
    wf1s = (wf1[:, 0::2] + wf1[:, 1::2]).astype(jnp.float32)          # (16, 16)
    wf2f = wf2.astype(jnp.float32)                                    # (3, 16)

    # Batch tiling: batch rows live on the lane axis of the output block so
    # every store is lane-dense; large tiles amortize per-grid-step overhead.
    tile_n = min(_MAX_TILE_N, _round_up(n, _LANE))
    m = _round_up(n, tile_n)
    grid = (m // tile_n,)

    def const_spec(arr):
        # Same block index every step -> weight stays VMEM-resident.
        return pl.BlockSpec(arr.shape, lambda i: (0, 0))

    weights = (b1_p, w2s, b2_p, wf1s, bf1_p, wf2f, bf2_p)

    out_t = pl.pallas_call(
        lenet_kernel,
        out_shape=jax.ShapeDtypeStruct((3, m), jnp.float32),
        grid_spec=pltpu.PrefetchScalarGridSpec(
            num_scalar_prefetch=0,
            grid=grid,
            in_specs=[const_spec(w) for w in weights],
            out_specs=pl.BlockSpec((3, tile_n), lambda i: (0, i)),
        ),
        compiler_params=pltpu.CompilerParams(
            dimension_semantics=("parallel",),   # v7x: shard tiles across 2 TCs
            vmem_limit_bytes=32 * 1024 * 1024,
        ),
    )(*weights)

    return out_t[:, :n].T                                             # (N, 3)


def lenet_ref(x, params):
    """Pure-JAX reference mirroring the PyTorch module (NCHW, full conv path)."""
    w1c, b1, w2c, b2, wf1, bf1, wf2, bf2 = params
    img = x[:, None, None, :]                    # (N, 1, 1, D)
    dn = ('NCHW', 'OIHW', 'NCHW')
    y = jax.lax.conv_general_dilated(img, w1c, (1, 1), ((1, 1), (1, 1)),
                                     dimension_numbers=dn)
    y = jnp.maximum(y + b1.reshape(1, -1, 1, 1), 0.0)
    y = jax.lax.reduce_window(y, -jnp.inf, jax.lax.max,
                              (1, 1, 1, 2), (1, 1, 2, 2), 'VALID')
    y = jax.lax.conv_general_dilated(y, w2c, (1, 1), 'VALID',
                                     dimension_numbers=dn)
    y = jnp.maximum(y + b2.reshape(1, -1, 1, 1), 0.0)
    flat = y.reshape(x.shape[0], -1)             # (N, 32)
    a = jnp.maximum(flat @ wf1.T + bf1, 0.0)
    return a @ wf2.T + bf2


def init_params(key):
    ks = jax.random.split(key, 8)
    w1c = 0.5 * jax.random.normal(ks[0], (6, 1, 1, 2), jnp.float32)
    b1 = 0.5 * jax.random.normal(ks[1], (6,), jnp.float32)
    w2c = 0.2 * jax.random.normal(ks[2], (16, 6, 1, 2), jnp.float32)
    b2 = 0.2 * jax.random.normal(ks[3], (16,), jnp.float32)
    wf1 = 0.2 * jax.random.normal(ks[4], (16, 32), jnp.float32)
    bf1 = 0.2 * jax.random.normal(ks[5], (16,), jnp.float32)
    wf2 = 0.2 * jax.random.normal(ks[6], (3, 16), jnp.float32)
    bf2 = 0.2 * jax.random.normal(ks[7], (3,), jnp.float32)
    return (w1c, b1, w2c, b2, wf1, bf1, wf2, bf2)


if __name__ == "__main__":
    key = jax.random.PRNGKey(0)
    kx, kp = jax.random.split(key)
    x = jax.random.normal(kx, (8, 4), jnp.float32)   # (batch, features)
    params = init_params(kp)

    out = jax.block_until_ready(lenet_forward(x, params))
    ref = jax.block_until_ready(lenet_ref(x, params))
    np.testing.assert_allclose(np.asarray(out), np.asarray(ref),
                               rtol=1e-5, atol=1e-5)
    print("KERNEL_OK")
</pallas_src>

<mosaic_0001>
module attributes {stable_mosaic.version = 11 : i64} {
  func.func @lenet_kernel(%arg0: i32, %arg1: memref<6x128xf32, #tpu.memory_space<vmem>>, %arg2: memref<16x6xf32, #tpu.memory_space<vmem>>, %arg3: memref<16x128xf32, #tpu.memory_space<vmem>>, %arg4: memref<16x16xf32, #tpu.memory_space<vmem>>, %arg5: memref<16x128xf32, #tpu.memory_space<vmem>>, %arg6: memref<3x16xf32, #tpu.memory_space<vmem>>, %arg7: memref<3x128xf32, #tpu.memory_space<vmem>>, %arg8: memref<3x128xf32, #tpu.memory_space<vmem>>) attributes {dimension_semantics = [#tpu.dimension_semantics<parallel>], iteration_bounds = array<i64: 1>, scalar_prefetch = 0 : i64, scratch_operands = 0 : i64, tpu.core_type = #tpu.core_type<tc>, window_params = [{pipeline_mode = #tpu.pipeline_mode<synchronous>, transform_indices = @transform_0, window_bounds = array<i64: 6, 128>}, {pipeline_mode = #tpu.pipeline_mode<synchronous>, transform_indices = @transform_1, window_bounds = array<i64: 16, 6>}, {pipeline_mode = #tpu.pipeline_mode<synchronous>, transform_indices = @transform_2, window_bounds = array<i64: 16, 128>}, {pipeline_mode = #tpu.pipeline_mode<synchronous>, transform_indices = @transform_3, window_bounds = array<i64: 16, 16>}, {pipeline_mode = #tpu.pipeline_mode<synchronous>, transform_indices = @transform_4, window_bounds = array<i64: 16, 128>}, {pipeline_mode = #tpu.pipeline_mode<synchronous>, transform_indices = @transform_5, window_bounds = array<i64: 3, 16>}, {pipeline_mode = #tpu.pipeline_mode<synchronous>, transform_indices = @transform_6, window_bounds = array<i64: 3, 128>}, {transform_indices = @transform_7, window_bounds = array<i64: 3, 128>}]} {
    %c0 = arith.constant 0 : index
    %c0_0 = arith.constant 0 : index
    %0 = vector.load %arg1[%c0, %c0_0] : memref<6x128xf32, #tpu.memory_space<vmem>>, vector<6x128xf32>
    %cst = arith.constant 0.000000e+00 : f32
    %1 = vector.broadcast %cst : f32 to vector<6x128xf32>
    %2 = arith.maximumf %0, %1 : vector<6x128xf32>
    %c0_1 = arith.constant 0 : index
    %c0_2 = arith.constant 0 : index
    %3 = vector.load %arg2[%c0_1, %c0_2] : memref<16x6xf32, #tpu.memory_space<vmem>>, vector<16x6xf32>
    %cst_3 = arith.constant dense<0.000000e+00> : vector<16x128xf32>
    %4 = tpu.matmul %3, %2, %cst_3 {dimension_numbers = #tpu.dot_dimension_numbers<[1], [0], [0], [1], [0, 0, 1, 1], [], []>} : vector<16x6xf32>, vector<6x128xf32>, vector<16x128xf32> -> vector<16x128xf32>
    %c0_4 = arith.constant 0 : index
    %c0_5 = arith.constant 0 : index
    %5 = vector.load %arg3[%c0_4, %c0_5] : memref<16x128xf32, #tpu.memory_space<vmem>>, vector<16x128xf32>
    %6 = arith.addf %4, %5 : vector<16x128xf32>
    %cst_6 = arith.constant 0.000000e+00 : f32
    %7 = vector.broadcast %cst_6 : f32 to vector<16x128xf32>
    %8 = arith.maximumf %6, %7 : vector<16x128xf32>
    %c0_7 = arith.constant 0 : index
    %c0_8 = arith.constant 0 : index
    %9 = vector.load %arg4[%c0_7, %c0_8] : memref<16x16xf32, #tpu.memory_space<vmem>>, vector<16x16xf32>
    %cst_9 = arith.constant dense<0.000000e+00> : vector<16x128xf32>
    %10 = tpu.matmul %9, %8, %cst_9 {dimension_numbers = #tpu.dot_dimension_numbers<[1], [0], [0], [1], [0, 0, 1, 1], [], []>} : vector<16x16xf32>, vector<16x128xf32>, vector<16x128xf32> -> vector<16x128xf32>
    %c0_10 = arith.constant 0 : index
    %c0_11 = arith.constant 0 : index
    %11 = vector.load %arg5[%c0_10, %c0_11] : memref<16x128xf32, #tpu.memory_space<vmem>>, vector<16x128xf32>
    %12 = arith.addf %10, %11 : vector<16x128xf32>
    %cst_12 = arith.constant 0.000000e+00 : f32
    %13 = vector.broadcast %cst_12 : f32 to vector<16x128xf32>
    %14 = arith.maximumf %12, %13 : vector<16x128xf32>
    %c0_13 = arith.constant 0 : index
    %c0_14 = arith.constant 0 : index
    %15 = vector.load %arg6[%c0_13, %c0_14] : memref<3x16xf32, #tpu.memory_space<vmem>>, vector<3x16xf32>
    %cst_15 = arith.constant dense<0.000000e+00> : vector<3x128xf32>
    %16 = tpu.matmul %15, %14, %cst_15 {dimension_numbers = #tpu.dot_dimension_numbers<[1], [0], [0], [1], [0, 0, 1, 1], [], []>} : vector<3x16xf32>, vector<16x128xf32>, vector<3x128xf32> -> vector<3x128xf32>
    %c0_16 = arith.constant 0 : index
    %c0_17 = arith.constant 0 : index
    %17 = vector.load %arg7[%c0_16, %c0_17] : memref<3x128xf32, #tpu.memory_space<vmem>>, vector<3x128xf32>
    %18 = arith.addf %16, %17 : vector<3x128xf32>
    %19 = vector.extract_strided_slice %18 {offsets = [0, 0], sizes = [3, 1], strides = [1, 1]} : vector<3x128xf32> to vector<3x1xf32>
    %20 = vector.shape_cast %19 : vector<3x1xf32> to vector<3x1xf32>
    %21 = vector.broadcast %20 : vector<3x1xf32> to vector<3x128xf32>
    %c0_18 = arith.constant 0 : index
    %c0_19 = arith.constant 0 : index
    %22 = vector.load %arg8[%c0_18, %c0_19] : memref<3x128xf32, #tpu.memory_space<vmem>>, vector<3x128xf32>
    tpu.vector_store %arg8[%c0_18, %c0_19], %21 {strides = array<i32>} : memref<3x128xf32, #tpu.memory_space<vmem>>, vector<3x128xf32>,
    return
  }
  func.func @transform_0(%arg0: i32) -> (i32, i32) {
    %c0_i32 = arith.constant 0 : i32
    %c0_i32_0 = arith.constant 0 : i32
    %c0_i32_1 = arith.constant 0 : i32
    return %c0_i32, %c0_i32_0 : i32, i32
  }
  func.func @transform_1(%arg0: i32) -> (i32, i32) {
    %c0_i32 = arith.constant 0 : i32
    %c0_i32_0 = arith.constant 0 : i32
    %c0_i32_1 = arith.constant 0 : i32
    return %c0_i32, %c0_i32_0 : i32, i32
  }
  func.func @transform_2(%arg0: i32) -> (i32, i32) {
    %c0_i32 = arith.constant 0 : i32
    %c0_i32_0 = arith.constant 0 : i32
    %c0_i32_1 = arith.constant 0 : i32
    return %c0_i32, %c0_i32_0 : i32, i32
  }
  func.func @transform_3(%arg0: i32) -> (i32, i32) {
    %c0_i32 = arith.constant 0 : i32
    %c0_i32_0 = arith.constant 0 : i32
    %c0_i32_1 = arith.constant 0 : i32
    return %c0_i32, %c0_i32_0 : i32, i32
  }
  func.func @transform_4(%arg0: i32) -> (i32, i32) {
    %c0_i32 = arith.constant 0 : i32
    %c0_i32_0 = arith.constant 0 : i32
    %c0_i32_1 = arith.constant 0 : i32
    return %c0_i32, %c0_i32_0 : i32, i32
  }
  func.func @transform_5(%arg0: i32) -> (i32, i32) {
    %c0_i32 = arith.constant 0 : i32
    %c0_i32_0 = arith.constant 0 : i32
    %c0_i32_1 = arith.constant 0 : i32
    return %c0_i32, %c0_i32_0 : i32, i32
  }
  func.func @transform_6(%arg0: i32) -> (i32, i32) {
    %c0_i32 = arith.constant 0 : i32
    %c0_i32_0 = arith.constant 0 : i32
    %c0_i32_1 = arith.constant 0 : i32
    return %c0_i32, %c0_i32_0 : i32, i32
  }
  func.func @transform_7(%arg0: i32) -> (i32, i32) {
    %c0_i32 = arith.constant 0 : i32
    %c0_i32_0 = arith.constant 0 : i32
    return %c0_i32, %arg0 : i32, i32
  }
}

</mosaic_0001>

<bundles_post_ra>
// kernel: tpu_custom_call.1
= control target key start
LH: loop header
LB: loop body
LE: loop exit
PB: predicated region body
PF: predicated region fallthrough
CT: control target
= control target key end

     0   :  { %12 = vsyncpa [#allocation3], 0  ;;  %s525_s0 = inlined_call_operand.vmem [shape: f32[6,128], index: 0, kind: input, shape index: {}]   ;;  %s526_s1 = inlined_call_operand.vmem [shape: f32[16,6], index: 1, kind: input, shape index: {}]   ;;  %s527_s2 = inlined_call_operand.vmem [shape: f32[16,128], index: 2, kind: input, shape index: {}]   ;;  %s528_s3 = inlined_call_operand.hbm [shape: f32[16,16], index: 3, kind: input, shape index: {}]   ;;  %s529_s4 = inlined_call_operand.hbm [shape: f32[16,128], index: 4, kind: input, shape index: {}]   ;;  %s530_s5 = inlined_call_operand.vmem [shape: f32[3,16], index: 5, kind: input, shape index: {}]   ;;  %s531_s6 = inlined_call_operand.vmem [shape: f32[3,128], index: 6, kind: input, shape index: {}]   ;;  %s532_s7 = inlined_call_operand.hbm [shape: f32[3,128], index: 7, kind: output, shape index: {}]  }
   0x1   :  { %13 = vsyncpa [#allocation6], 0 }
   0x2   :  { %14 = vsyncpa [#allocation4], 0  ;;  %s444_s24 = smov [#allocation2]  }
   0x3   :  { %s26_s25 = sshll.u32 %s444_s24, 4  ;;  %s27_s25 = int_to_ptr.vmem [resolvable:$true] %s26_s25 }
   0x4   :  { %s386_s26 = scalar_lea.vmem %s27_s25, 256  ;;  %p391_p1 = scmp.lt.s32.totalorder %s27_s25, %s27_s25 }
   0x5   :  { %p387_p0 = scmp.ne.s32.totalorder %s27_s25, %s386_s26  ;;  %p392_p2 = scmp.lt.s32.totalorder %s386_s26, %s386_s26 }
   0x7   :  { %p393_p3 = por %p392_p2, %p391_p1 }
   0x9   :  { %p394_p4 = pnand %p393_p3, %p387_p0 }
   0xb   :  { %397 = shalt.err (!%p394_p4)
}
   0xc   :  { %s445_s27 = smov 128   ;;  %s446_s28 = smov 8  }
   0xd   :  { %32 = dma.hbm_to_vmem [thread:$0]  %s528_s3, 256, %s27_s25, [#allocation3], %s445_s27, %s445_s27, %s446_s28  }
   0xe   :  { %s447_s8 = smov [#allocation5]  }
   0xf   :  { %s38_s9 = sshll.u32 %s447_s8, 4  ;;  %s39_s9 = int_to_ptr.vmem [resolvable:$true] %s38_s9 }
  0x10   :  { %s406_s10 = scalar_lea.vmem %s39_s9, 256  ;;  %p411_p6 = scmp.lt.s32.totalorder %s39_s9, %s39_s9 }
  0x11   :  { %p407_p5 = scmp.ne.s32.totalorder %s39_s9, %s406_s10  ;;  %p412_p7 = scmp.lt.s32.totalorder %s406_s10, %s406_s10 }
  0x13   :  { %p413_p8 = por %p412_p7, %p411_p6 }
  0x15   :  { %p414_p9 = pnand %p413_p8, %p407_p5 }
  0x17   :  { %417 = shalt.err (!%p414_p9)
}
  0x18   :  { %44 = dma.hbm_to_vmem [thread:$0]  %s529_s4, 256, %s39_s9, [#allocation6], %s445_s27, %s445_s27, %s446_s28  }
  0x19   :  { %438 = dma.done.wait [#allocation3], 256  }
  0x1a   :  { %439 = vsyncadd [#allocation3], 4294967040 }
  0x1b   :  { %440 = dma.done.wait [#allocation6], 256  }
  0x1c   :  { %441 = vsyncadd [#allocation6], 4294967040  ;;  %vm61_vm0 = vcmask 48128   ;;  %v55_v0 = vld [vmem:[%s525_s0] sm:$0x3f]  ;;  %vm68_vm1 = vcmask 1045504  }
  0x1d   :  { %v57_v1 = vld [vmem:[%s526_s1] sm:$0xff]  ;;  %v56_v2 = vmax.f32 %v55_v0, 0.0  ;;  %v58_v3 = vld [vmem:[%s526_s1 + $0x8] sm:$0xff]  ;;  %vm153_vm2 = vcmask 130048   ;;  %v448_v14 = vmov 0.0   ;;  %vm449_vm3 = vmmov 0  }
  0x1e   :  { %352 = vmatprep.mubr.msk.f32.mxu0 %vm61_vm0, %v57_v1  ;;  %v149_v4 = vld [vmem:[#allocation2] sm:$0xff]  ;;  %v60_v5 = vld [vmem:[%s527_s2 + $0x8] sm:$0xff]  ;;  %v152_v15 = vld [vmem:[#allocation5 + $0x8] sm:$0xff]  ;;  %v450_v24 = vmov 0   ;;  %s451_s22 = smov [#allocation7]  }
  0x1f   :  { %350 = vmatprep.subr.msk.mxu0 %vm68_vm1, %v56_v2  ;;  %359 = vmatprep.mubr.msk.f32.mxu1 %vm153_vm2, %v149_v4  ;;  %v59_v7 = vld [vmem:[%s527_s2] sm:$0xff]  ;;  %v150_v13 = vld [vmem:[#allocation2 + $0x8] sm:$0xff]  ;;  %v151_v17 = vld [vmem:[#allocation5] sm:$0xff]  ;;  %s324_s23 = sshll.u32 %s451_s22, 4  ;;  %s325_s23 = int_to_ptr.vmem [resolvable:$true] %s324_s23 }
  0x20   :  { %351 = vmatpush3.msk.msra.mxu0 %vm68_vm1, %v56_v2  ;;  %v237_v23 = vld [vmem:[%s530_s5] sm:$0x7]  ;;  %377 = vset.pattern.permute.xlu0 %v450_v24  ;;  %s418_s5 = scalar_lea.vmem %s325_s23, 64  ;;  %p423_p11 = scmp.lt.s32.totalorder %s325_s23, %s325_s23 }
  0x21   :  { %353 = vmatmul.mubr.msk.f32.vlgmr.msra.gmra.mxu0 %vm61_vm0, %v58_v3  ;;  %362 = vmatprep.subr.mxu0 %v448_v14  ;;  %v238_v25 = vld [vmem:[%s531_s6] sm:$0x7]  ;;  %p419_p10 = scmp.ne.s32.totalorder %s325_s23, %s418_s5  ;;  %p424_p12 = scmp.lt.s32.totalorder %s418_s5, %s418_s5 }
  0x22   :  { %366 = vmatprep.mubr.msk.f32.mxu0 %vm449_vm3, %v448_v14 }
  0x23   :  { %p425_p13 = por %p424_p12, %p423_p11 }
  0x25   :  { %p426_p0 = pnand %p425_p13, %p419_p10 }
  0xe1   :  { %v354_v6 = vpop.f32.mrf.mxu0 }
  0xe2   :  { %v144_v8 = vadd.f32 %v354_v6, %v60_v5 }
  0xe3   :  { %v138_v9 = vpop.f32.mrf.mxu0 }
  0xe4   :  { %v148_v10 = vmax.f32 %v144_v8, 0.0  ;;  %v139_v11 = vadd.f32 %v138_v9, %v59_v7 }
  0xe6   :  { %v147_v12 = vmax.f32 %v139_v11, 0.0  ;;  %355 = vmatprep.subr.mxu1 %v148_v10 }
  0xe7   :  { %356 = vmatpush3.msra.mxu1 %v148_v10 }
  0xe8   :  { %357 = vmatprep.subr.mxu1 %v147_v12 }
  0xe9   :  { %358 = vmatpush3.msra.mxu1 %v147_v12 }
  0xea   :  { %360 = vmatmul.mubr.msk.f32.vlgmr.msra.gmra.mxu1 %vm153_vm2, %v150_v13 }
 0x1aa   :  { %v361_v16 = vpop.f32.mrf.mxu1 }
 0x1ab   :  { %v232_v18 = vadd.f32 %v361_v16, %v152_v15 }
 0x1ac   :  { %v226_v19 = vpop.f32.mrf.mxu1 }
 0x1ad   :  { %v236_v20 = vmax.f32 %v232_v18, 0.0  ;;  %v227_v21 = vadd.f32 %v226_v19, %v151_v17 }
 0x1af   :  { %v235_v22 = vmax.f32 %v227_v21, 0.0  ;;  %363 = vmatpush3.msra.mxu0 %v236_v20 }
 0x1b0   :  { %364 = vmatprep.subr.mxu0 %v448_v14 }
 0x1b1   :  { %365 = vmatpush3.msra.mxu0 %v235_v22 }
 0x1b2   :  { %367 = vmatmul.mubr.msk.f32.vlgmr.msra.gmra.mxu0 %vm153_vm2, %v237_v23 }
 0x272   :  { %v308_v26 = vpop.f32.mrf.mxu0 }
 0x273   :  { %v309_v27 = vadd.f32 %v308_v26, %v238_v25 }
 0x274   :  { %v368_v28 = vpop.f32.mrf.mxu0 }
 0x275   :  { %314 = vperm.xlu0 %377, %v309_v27  }
 0x2f0   :  { %v315_v29 = vpop.permute.xlu0 %314 }
 0x2f1   :  { %317 = vst [vmem:[#allocation7] sm:$0x7] %v315_v29 }
 0x2f2   :  { %429 = shalt.err (!%p426_p0)
}
 0x2f3   :  { %327 = dma.vmem_to_hbm [thread:$0]  %s325_s23, 64, %s532_s7, [#allocation4]  }
 0x2f4   :  { %442 = dma.done.wait [#allocation4], 64  }
 0x2f5   :  { %443 = vsyncadd [#allocation4], 4294967232 }
 0x2f6   :  { %331 = vsyncpa [#allocation3], 1 }
 0x2f7   :  { %332 = vsyncpa [#allocation6], 1 }
 0x2f8   :  { %333 = vsyncpa [#allocation4], 1 }

</bundles_post_ra>
